<compile_context>
chip_gen: v6e
topology: v6e:2x2x1
jax: 0.10.0
libtpu: 0.0.40
codegen_flags: <defaults>
</compile_context>

<pallas_src>
import functools

import numpy as np
import jax
import jax.numpy as jnp
from jax.experimental import pallas as pl
from jax.experimental.pallas import tpu as pltpu


def _cdiv(a, b):
    return -(-a // b)


def _round_up(a, b):
    return _cdiv(a, b) * b


def _tensorcores_per_chip():
    # Only v7x has 2 TensorCores per chip; forcing a >= 2-step parallel grid on
    # single-TC chips (v5e/v6e) would just add a grid step of fixed overhead.
    try:
        kind = jax.devices()[0].device_kind.lower()
    except Exception:
        return 1
    return 2 if "v7" in kind else 1


def lr_kernel(idx_ref, w_ref, bias_ref, out_ref, *, field_pads):
    # idx_ref : (F, TB)        int32  -- RAW per-field indices, batch on lanes
    # w_ref   : (Vpad_max, F)  f32    -- per-field weight columns, vocab on sublanes
    #                                    (offsets already baked in host-side)
    # bias_ref: (1,)           f32    -- SMEM scalar
    # out_ref : (1, TB)        f32    -- sigmoid(logit), lane-dense row
    tb = idx_ref.shape[1]
    w = w_ref[...]                                            # (Vpad_max, F)
    logit = jnp.zeros((1, tb), jnp.float32)
    for f, vfp in enumerate(field_pads):                      # static & small -> unrolled
        # Compare only against this field's (padded) vocab slice: ~Vf_pad*TB work.
        iota_f = jax.lax.broadcasted_iota(jnp.int32, (vfp, tb), 0)
        eq = idx_ref[f:f + 1, :] == iota_f                    # (vfp, TB) one-hot mask
        w_col = w[:vfp, f:f + 1]                              # (vfp, 1), lane-broadcast
        # Weight fused into the select; one XLU sublane reduce per field, only
        # the (1, TB) logit stays live across the loop.
        logit = logit + jnp.sum(jnp.where(eq, w_col, 0.0), axis=0, keepdims=True)
    # NOTE: out-of-range / negative raw indices silently contribute 0 (no iota
    # row matches or a zero-padded weight row is hit) instead of raising like
    # torch.nn.Embedding -- behavioral difference only; in-range inputs are exact.
    out_ref[...] = jax.nn.sigmoid(logit + bias_ref[0])


@functools.partial(jax.jit, static_argnames=("field_dims", "batch_tile"))
def lr_forward(x_idx, weight, bias, *, field_dims, batch_tile=2048):
    """x_idx: (B, F) int field indices; weight: (sum(field_dims), 1); bias: (1,).

    Returns sigmoid(sum_f weight[x_idx[:, f] + offsets[f], 0] + bias[0]), shape (B,).
    """
    field_dims = tuple(int(d) for d in field_dims)
    B, F = x_idx.shape
    assert F == len(field_dims)
    offsets = np.concatenate(([0], np.cumsum(field_dims)[:-1])).astype(np.int64)
    field_pads = tuple(int(_round_up(d, 8)) for d in field_dims)
    vpad = max(field_pads)

    # Lane-dense batch tile (multiple of 128, default 2048 to amortize the
    # ~0.35 us per-grid-step overhead).  Only force >= 2 grid steps on chips
    # with 2 TensorCores (v7x) so megacore sharding has work for both cores.
    tb = _round_up(min(int(batch_tile), _round_up(B, 128)), 128)
    if _tensorcores_per_chip() >= 2 and B > 128 and _cdiv(B, tb) < 2:
        tb = _round_up(_cdiv(B, 2), 128)
    B_pad = _round_up(B, tb)
    grid = B_pad // tb

    # Repack the table per field: w_packed[v, f] = weight[offsets[f] + v, 0]
    # (zero-padded to vpad rows).  Vocab on sublanes / fields on lanes avoids
    # the 128x lane padding of a (V, 1) column and bakes the offsets in so the
    # kernel never performs the `idx + offsets` add.
    w1 = weight.reshape(-1).astype(jnp.float32)
    cols = []
    for f, d in enumerate(field_dims):
        col = w1[int(offsets[f]):int(offsets[f]) + d]
        cols.append(jnp.pad(col, (0, vpad - d)))
    w_packed = jnp.stack(cols, axis=1)                        # (vpad, F)

    # Pad the ragged batch tail with index 0 (a valid row of every field slice);
    # padded lanes are computed and sliced off below -- nothing real is dropped
    # and the padded region is never aliased into the returned output.
    x32 = x_idx.astype(jnp.int32)
    x_t = jnp.pad(x32, ((0, B_pad - B), (0, 0))).T            # (F, B_pad): batch -> lanes
    bias_s = bias.reshape(1).astype(jnp.float32)

    kernel = functools.partial(lr_kernel, field_pads=field_pads)
    out = pl.pallas_call(
        kernel,
        out_shape=jax.ShapeDtypeStruct((1, B_pad), jnp.float32),
        grid_spec=pltpu.PrefetchScalarGridSpec(
            num_scalar_prefetch=0,
            grid=(grid,),
            in_specs=[
                pl.BlockSpec((F, tb), lambda b: (0, b)),            # indices (lane-dense)
                pl.BlockSpec((vpad, F), lambda b: (0, 0)),          # packed table (resident;
                                                                    # tiny, default buffering fine)
                pl.BlockSpec(memory_space=pltpu.MemorySpace.SMEM),  # bias scalar in SMEM
            ],
            out_specs=pl.BlockSpec((1, tb), lambda b: (0, b)),
        ),
        compiler_params=pltpu.CompilerParams(
            dimension_semantics=("parallel",),
            # Allow XLA to fuse the wrapper-side pad+transpose of the index
            # tensor into the pallas_call operand (removes an extra HBM pass).
            allow_input_fusion=[True, False, False],
        ),
    )(x_t, w_packed, bias_s)
    # TODO(synk): for CTR-scale vocabularies (max field_dim >> 1e4) keep the table
    # HBM-resident (memory_space=pl.ANY) and do a scalar-prefetch / manual-DMA row
    # gather instead of the in-VMEM compare-select; the dense packed table would
    # not fit v7x's 64 MiB VMEM and the compare work would scale poorly.
    return out[0, :B]


if __name__ == "__main__":
    # Synthetic LR model: field_dims as in FeaturesLinear.__init__
    field_dims = (3, 5, 7, 11)
    num_fields = len(field_dims)
    vocab = int(np.sum(field_dims))
    offsets_np = np.array((0, *np.cumsum(field_dims)[:-1]), dtype=np.int32)

    key = jax.random.PRNGKey(0)
    k_w, *k_fields = jax.random.split(key, 1 + num_fields)

    # Deterministic parameter init (Embedding weight ~ N(0,1)*0.1, bias = 0)
    weight = 0.1 * jax.random.normal(k_w, (vocab, 1), dtype=jnp.float32)
    bias = jnp.zeros((1,), dtype=jnp.float32)

    # Deterministic inputs: per-field categorical indices, batch = 16
    batch = 16
    cols = [
        jax.random.randint(k_fields[f], (batch,), 0, field_dims[f], dtype=jnp.int32)
        for f in range(num_fields)
    ]
    x = jnp.stack(cols, axis=1)                               # (batch, num_fields) int32

    out = lr_forward(x, weight, bias, field_dims=field_dims)
    out = jax.block_until_ready(out)

    # Pure-JAX reference of the exact PyTorch semantics.
    idx_full = x + offsets_np[None, :]
    ref = jax.nn.sigmoid(jnp.sum(weight[idx_full, 0], axis=1) + bias[0])
    assert out.shape == (batch,)
    assert jnp.allclose(out, ref, rtol=1e-5, atol=1e-6)

    print("KERNEL_OK")
</pallas_src>

<mosaic_0001>
module attributes {stable_mosaic.version = 11 : i64} {
  func.func @lr_kernel(%arg0: i32, %arg1: memref<4x128xi32, #tpu.memory_space<vmem>>, %arg2: memref<16x4xf32, #tpu.memory_space<vmem>>, %arg3: memref<1xf32, #tpu.memory_space<smem>>, %arg4: memref<1x128xf32, #tpu.memory_space<vmem>>) attributes {dimension_semantics = [#tpu.dimension_semantics<parallel>], iteration_bounds = array<i64: 1>, scalar_prefetch = 0 : i64, scratch_operands = 0 : i64, tpu.core_type = #tpu.core_type<tc>, window_params = [{transform_indices = @transform_0, window_bounds = array<i64: 4, 128>}, {pipeline_mode = #tpu.pipeline_mode<synchronous>, transform_indices = @transform_1, window_bounds = array<i64: 16, 4>}, {transform_indices = @transform_2, window_bounds = array<i64: 1>}, {transform_indices = @transform_3, window_bounds = array<i64: 1, 128>}]} {
    %c0 = arith.constant 0 : index
    %c0_0 = arith.constant 0 : index
    %0 = vector.load %arg2[%c0, %c0_0] : memref<16x4xf32, #tpu.memory_space<vmem>>, vector<16x4xf32>
    %cst = arith.constant 0.000000e+00 : f32
    %1 = vector.broadcast %cst : f32 to vector<1x128xf32>
    %2 = tpu.iota {dimensions = array<i32: 0>} : vector<8x128xi32>
    %c0_1 = arith.constant 0 : index
    %c0_2 = arith.constant 0 : index
    %3 = vector.load %arg1[%c0_1, %c0_2] : memref<4x128xi32, #tpu.memory_space<vmem>>, vector<1x128xi32>
    %4 = vector.broadcast %3 : vector<1x128xi32> to vector<8x128xi32>
    %5 = arith.cmpi eq, %4, %2 : vector<8x128xi32>
    %6 = vector.extract_strided_slice %0 {offsets = [0, 0], sizes = [8, 1], strides = [1, 1]} : vector<16x4xf32> to vector<8x1xf32>
    %cst_3 = arith.constant 0.000000e+00 : f32
    %7 = vector.shape_cast %6 : vector<8x1xf32> to vector<8x1xf32>
    %8 = vector.broadcast %7 : vector<8x1xf32> to vector<8x128xf32>
    %9 = vector.broadcast %cst_3 : f32 to vector<8x128xf32>
    %10 = arith.select %5, %8, %9 : vector<8x128xi1>, vector<8x128xf32>
    %cst_4 = arith.constant dense<0.000000e+00> : vector<128xf32>
    %11 = vector.multi_reduction <add>, %10, %cst_4 [0] : vector<8x128xf32> to vector<128xf32>
    %12 = vector.shape_cast %11 : vector<128xf32> to vector<1x128xf32>
    %13 = arith.addf %1, %12 : vector<1x128xf32>
    %14 = tpu.iota {dimensions = array<i32: 0>} : vector<8x128xi32>
    %c1 = arith.constant 1 : index
    %c0_5 = arith.constant 0 : index
    %15 = vector.load %arg1[%c1, %c0_5] : memref<4x128xi32, #tpu.memory_space<vmem>>, vector<1x128xi32>
    %16 = vector.broadcast %15 : vector<1x128xi32> to vector<8x128xi32>
    %17 = arith.cmpi eq, %16, %14 : vector<8x128xi32>
    %18 = vector.extract_strided_slice %0 {offsets = [0, 1], sizes = [8, 1], strides = [1, 1]} : vector<16x4xf32> to vector<8x1xf32>
    %cst_6 = arith.constant 0.000000e+00 : f32
    %19 = vector.shape_cast %18 : vector<8x1xf32> to vector<8x1xf32>
    %20 = vector.broadcast %19 : vector<8x1xf32> to vector<8x128xf32>
    %21 = vector.broadcast %cst_6 : f32 to vector<8x128xf32>
    %22 = arith.select %17, %20, %21 : vector<8x128xi1>, vector<8x128xf32>
    %cst_7 = arith.constant dense<0.000000e+00> : vector<128xf32>
    %23 = vector.multi_reduction <add>, %22, %cst_7 [0] : vector<8x128xf32> to vector<128xf32>
    %24 = vector.shape_cast %23 : vector<128xf32> to vector<1x128xf32>
    %25 = arith.addf %13, %24 : vector<1x128xf32>
    %26 = tpu.iota {dimensions = array<i32: 0>} : vector<8x128xi32>
    %c2 = arith.constant 2 : index
    %c0_8 = arith.constant 0 : index
    %27 = vector.load %arg1[%c2, %c0_8] : memref<4x128xi32, #tpu.memory_space<vmem>>, vector<1x128xi32>
    %28 = vector.broadcast %27 : vector<1x128xi32> to vector<8x128xi32>
    %29 = arith.cmpi eq, %28, %26 : vector<8x128xi32>
    %30 = vector.extract_strided_slice %0 {offsets = [0, 2], sizes = [8, 1], strides = [1, 1]} : vector<16x4xf32> to vector<8x1xf32>
    %cst_9 = arith.constant 0.000000e+00 : f32
    %31 = vector.shape_cast %30 : vector<8x1xf32> to vector<8x1xf32>
    %32 = vector.broadcast %31 : vector<8x1xf32> to vector<8x128xf32>
    %33 = vector.broadcast %cst_9 : f32 to vector<8x128xf32>
    %34 = arith.select %29, %32, %33 : vector<8x128xi1>, vector<8x128xf32>
    %cst_10 = arith.constant dense<0.000000e+00> : vector<128xf32>
    %35 = vector.multi_reduction <add>, %34, %cst_10 [0] : vector<8x128xf32> to vector<128xf32>
    %36 = vector.shape_cast %35 : vector<128xf32> to vector<1x128xf32>
    %37 = arith.addf %25, %36 : vector<1x128xf32>
    %38 = tpu.iota {dimensions = array<i32: 0>} : vector<16x128xi32>
    %c3 = arith.constant 3 : index
    %c0_11 = arith.constant 0 : index
    %39 = vector.load %arg1[%c3, %c0_11] : memref<4x128xi32, #tpu.memory_space<vmem>>, vector<1x128xi32>
    %40 = vector.broadcast %39 : vector<1x128xi32> to vector<16x128xi32>
    %41 = arith.cmpi eq, %40, %38 : vector<16x128xi32>
    %42 = vector.extract_strided_slice %0 {offsets = [0, 3], sizes = [16, 1], strides = [1, 1]} : vector<16x4xf32> to vector<16x1xf32>
    %cst_12 = arith.constant 0.000000e+00 : f32
    %43 = vector.shape_cast %42 : vector<16x1xf32> to vector<16x1xf32>
    %44 = vector.broadcast %43 : vector<16x1xf32> to vector<16x128xf32>
    %45 = vector.broadcast %cst_12 : f32 to vector<16x128xf32>
    %46 = arith.select %41, %44, %45 : vector<16x128xi1>, vector<16x128xf32>
    %cst_13 = arith.constant dense<0.000000e+00> : vector<128xf32>
    %47 = vector.multi_reduction <add>, %46, %cst_13 [0] : vector<16x128xf32> to vector<128xf32>
    %48 = vector.shape_cast %47 : vector<128xf32> to vector<1x128xf32>
    %49 = arith.addf %37, %48 : vector<1x128xf32>
    %c0_14 = arith.constant 0 : index
    %50 = memref.load %arg3[%c0_14] : memref<1xf32, #tpu.memory_space<smem>>
    %51 = vector.broadcast %50 : f32 to vector<1x128xf32>
    %52 = arith.addf %49, %51 : vector<1x128xf32>
    %53 = arith.negf %52 : vector<1x128xf32>
    %54 = math.exp %53 : vector<1x128xf32>
    %cst_15 = arith.constant 1.000000e+00 : f32
    %55 = vector.broadcast %cst_15 : f32 to vector<1x128xf32>
    %56 = arith.addf %55, %54 : vector<1x128xf32>
    %57 = arith.divf %55, %56 : vector<1x128xf32>
    %c0_16 = arith.constant 0 : index
    %c0_17 = arith.constant 0 : index
    %58 = vector.load %arg4[%c0_16, %c0_17] : memref<1x128xf32, #tpu.memory_space<vmem>>, vector<1x128xf32>
    tpu.vector_store %arg4[%c0_16, %c0_17], %57 {strides = array<i32>} : memref<1x128xf32, #tpu.memory_space<vmem>>, vector<1x128xf32>,
    return
  }
  func.func @transform_0(%arg0: i32) -> (i32, i32) {
    %c0_i32 = arith.constant 0 : i32
    %c0_i32_0 = arith.constant 0 : i32
    return %c0_i32, %arg0 : i32, i32
  }
  func.func @transform_1(%arg0: i32) -> (i32, i32) {
    %c0_i32 = arith.constant 0 : i32
    %c0_i32_0 = arith.constant 0 : i32
    %c0_i32_1 = arith.constant 0 : i32
    return %c0_i32, %c0_i32_0 : i32, i32
  }
  func.func @transform_2(%arg0: i32) -> i32 {
    %c0_i32 = arith.constant 0 : i32
    %c0_i32_0 = arith.constant 0 : i32
    return %c0_i32 : i32
  }
  func.func @transform_3(%arg0: i32) -> (i32, i32) {
    %c0_i32 = arith.constant 0 : i32
    %c0_i32_0 = arith.constant 0 : i32
    return %c0_i32, %arg0 : i32, i32
  }
}

</mosaic_0001>

<bundles_post_ra>
// kernel: lr_forward.2
= control target key start
LH: loop header
LB: loop body
LE: loop exit
PB: predicated region body
PF: predicated region fallthrough
CT: control target
= control target key end

     0   :  { %s196_s0 = inlined_call_operand.vmem [shape: f32[16,4], index: 0, kind: input, shape index: {}]   ;;  %s197_s1 = inlined_call_operand.<no memory space> [shape: f32[1], index: 1, kind: input, shape index: {}]   ;;  %s198_s2 = inlined_call_operand.vmem [shape: s32[16,4], index: 2, kind: input, shape index: {}]   ;;  %s199_s3 = inlined_call_operand.<no memory space> [shape: s32[], index: 3, kind: input, shape index: {}]   ;;  %s200_s4 = inlined_call_operand.vmem [shape: f32[1,128], index: 4, kind: output, shape index: {}]  }
   0x1   :  { %v9_v0 = vstv %s199_s3 }
   0x2   :  { %v31_v1 = vld [vmem:[%s196_s0] sm:$0xff]  ;;  %v149_v2 = vmov 2   ;;  %v150_v3 = vmov 0   ;;  %v18_v4 = vlaneseq  ;;  %v151_v8 = vmov 3   ;;  %v32_v12 = vld [vmem:[%s196_s0 + $0x8] sm:$0xff] }
   0x3   :  { %142 = vset.pattern.permute.xlu1 %v149_v2  ;;  %140 = vset.pattern.permute.xlu0 %v150_v3  ;;  %v17_v5 = vld [vmem:[%s198_s2] sm:$0xf]  ;;  %v152_v9 = vmov 1   ;;  %v118_v55 = vstv %s197_s1 }
   0x4   :  { %79 = vperm.xlu1 %142, %v31_v1   ;;  %43 = vperm.xlu0 %140, %v31_v1   ;;  %v19_v6 = vshrl.u32 %v18_v4, 7  ;;  %v24_v7 = vand.u32 127, %v18_v4 }
   0x6   :  { %vm21_vm0 = vcmp.lt.s32.totalorder %v19_v6, 4  ;;  %vm26_vm1 = vcmp.lt.s32.totalorder %v24_v7, 16  ;;  %v90_v22 = vadd.s32 8, %v19_v6 }
   0x7   :  { %v22_v10 = vsel %vm21_vm0, %v17_v5, %v9_v0 }
   0x8   :  { %143 = vset.pattern.permute.xlu1 %v151_v8  ;;  %141 = vset.pattern.permute.xlu0 %v152_v9  ;;  %v27_v11 = vsel %vm26_vm1, %v22_v10, %v9_v0 }
   0x9   :  { %99 = vperm.xlu1 %143, %v31_v1   ;;  %61 = vperm.xlu0 %141, %v31_v1   ;;  %30 = vst [vmem:[#allocation8] sm:$0xf] %v27_v11 }
   0xd   :  { %104 = vperm.xlu1 %143, %v32_v12   ;;  %144 = vset.pattern.permute.xlu0 %v151_v8 }
  0x10   :  { %v133_v13 = vld [vmem:[#allocation8 + $0x2] ss:$0 sm:$0xff]  ;;  %v131_v14 = vld [vmem:[#allocation8] ss:$0 sm:$0xff]  ;;  %v132_v17 = vld [vmem:[#allocation8 + $0x1] ss:$0 sm:$0xff] }
  0x11   :  { %vm77_vm2 = vcmp.eq.s32.totalorder %v133_v13, %v19_v6  ;;  %vm40_vm3 = vcmp.eq.s32.totalorder %v131_v14, %v19_v6  ;;  %vm59_vm4 = vcmp.eq.s32.totalorder %v132_v17, %v19_v6  ;;  %v134_v24 = vld [vmem:[#allocation8 + $0x3] ss:$0 sm:$0xff] }
  0x12   :  { %vm96_vm5 = vcmp.eq.s32.totalorder %v134_v24, %v19_v6  ;;  %vm97_vm6 = vcmp.eq.s32.totalorder %v134_v24, %v90_v22 }
  0x7f   :  { %v80_v15 = vpop.permute.xlu1 %79  ;;  %v44_v16 = vpop.permute.xlu0 %43 }
  0x80   :  { %v82_v18 = vsel %vm77_vm2, %v80_v15, 0.0  ;;  %v46_v19 = vsel %vm40_vm3, %v44_v16, 0.0 }
  0x81   :  { %v83_v20 = vrot.slane %v82_v18, 4  ;;  %v47_v21 = vrot.slane %v46_v19, 4 }
  0x83   :  { %v48_v23 = vadd.f32 %v47_v21, %v46_v19  ;;  %v84_v25 = vadd.f32 %v83_v20, %v82_v18 }
  0x84   :  { %v100_v26 = vpop.permute.xlu1 %99  ;;  %v62_v27 = vpop.permute.xlu0 %61 }
  0x85   :  { %v49_v28 = vrot.slane %v48_v23, 2  ;;  %v64_v29 = vsel %vm59_vm4, %v62_v27, 0.0  ;;  %v85_v31 = vrot.slane %v84_v25, 2  ;;  %v107_v35 = vsel %vm96_vm5, %v100_v26, 0.0 }
  0x86   :  { %v65_v30 = vrot.slane %v64_v29, 4 }
  0x87   :  { %v50_v32 = vadd.f32 %v49_v28, %v48_v23  ;;  %v86_v39 = vadd.f32 %v85_v31, %v84_v25 }
  0x88   :  { %v66_v33 = vadd.f32 %v65_v30, %v64_v29  ;;  %v105_v34 = vpop.permute.xlu1 %104 }
  0x89   :  { %v108_v36 = vsel %vm97_vm6, %v105_v34, 0.0  ;;  %v51_v40 = vrot.slane %v50_v32, 1  ;;  %v87_v45 = vrot.slane %v86_v39, 1 }
  0x8a   :  { %v67_v37 = vrot.slane %v66_v33, 2  ;;  %v109_v38 = vadd.f32 %v108_v36, %v107_v35 }
  0x8b   :  { %v52_v46 = vadd.f32 %v51_v40, %v50_v32  ;;  %v88_v51 = vadd.f32 %v87_v45, %v86_v39 }
  0x8c   :  { %v68_v41 = vadd.f32 %v67_v37, %v66_v33  ;;  %v110_v42 = vrot.slane %v109_v38, 4 }
  0x8e   :  { %v69_v43 = vrot.slane %v68_v41, 1  ;;  %v111_v44 = vadd.f32 %v110_v42, %v109_v38 }
  0x90   :  { %v70_v47 = vadd.f32 %v69_v43, %v68_v41  ;;  %v112_v48 = vrot.slane %v111_v44, 2 }
  0x92   :  { %v71_v49 = vadd.f32 %v70_v47, %v52_v46  ;;  %v113_v50 = vadd.f32 %v112_v48, %v111_v44 }
  0x94   :  { %v114_v52 = vrot.slane %v113_v50, 1  ;;  %v89_v53 = vadd.f32 %v88_v51, %v71_v49 }
  0x96   :  { %v115_v54 = vadd.f32 %v114_v52, %v113_v50 }
  0x98   :  { %v116_v56 = vadd.f32 %v115_v54, %v89_v53 }
  0x9a   :  { %v119_v57 = vadd.f32 %v118_v55, %v116_v56 }
  0x9c   :  { %v135_v58 = vmul.f32 -1.442695, %v119_v57 }
  0x9e   :  { %145 = vpow2.f32 %v135_v58 }
  0xab   :  { %v146_v59 = vpop.eup %145 }
  0xac   :  { %v123_v60 = vadd.f32 1.0, %v146_v59 }
  0xae   :  { %147 = vrcp.f32 %v123_v60 }
  0xbb   :  { %v148_v61 = vpop.eup %147 }
  0xbc   :  { %126 = vst [vmem:[%s200_s4] sm:$0x1] %v148_v61 }

</bundles_post_ra>
